<compile_context>
chip_gen: v7x
topology: tpu7x:2x2x1
jax: 0.10.0
libtpu: 0.0.40
codegen_flags: <defaults>
</compile_context>

<pallas_src>
import functools
import math

import jax
import jax.numpy as jnp
from jax import lax
from jax.experimental import pallas as pl
from jax.experimental.pallas import tpu as pltpu


def _make_divisible(v, divisor, min_value=None):
    if min_value is None:
        min_value = divisor
    new_v = max(min_value, int(v + divisor / 2) // divisor * divisor)
    if new_v < 0.9 * v:
        new_v += divisor
    return new_v


def _fold_bn(gamma, beta, mean, var, eps):
    scale = gamma / jnp.sqrt(var + eps)
    bias = beta - mean * scale
    return scale, bias


def _vmem_capacity_bytes():
    """Physical VMEM of the current chip (conservative fallback: v7x 64 MiB)."""
    try:
        info = pltpu.get_tpu_info()
        cap = getattr(info, "vmem_capacity_bytes", None)
        if cap:
            return int(cap)
    except Exception:
        pass
    return 64 * 1024 * 1024


def _fused_mbconv_kernel(xt_ref, w1_ref, b1_ref, wp_ref, b2_ref, o_ref,
                         *, kq, tile_len, wq, resid_off):
    # xt_ref : (1, 1, Cq, RH*Wq)  bf16 halo'd activation tile, rows flattened
    #                             over the padded width Wq.
    # w1_ref : (kq*kq, F, Cq)     bf16 per-tap conv1 weights (BN1 scale folded)
    # b1_ref : (F, 1)             f32 folded BN1 bias
    # wp_ref : (Oup, F)           bf16 1x1 conv weights (BN2 scale folded)
    # b2_ref : (Oup, 1)           f32 folded BN2 bias
    # o_ref  : (1, Oup, tile_len) output tile (lane-dense flat store)
    x = xt_ref[0, 0]                                    # (Cq, RH*Wq) bf16
    feat = w1_ref.shape[1]

    # k×k conv as kq² shifted-slice tap matmuls accumulated in f32 on the MXU.
    acc = jnp.zeros((feat, tile_len), jnp.float32)
    for a in range(kq):                                 # static unroll
        for b in range(kq):
            off = a * wq + b                            # constant flat shift
            tap = x[:, off:off + tile_len]              # contiguous lane slice
            acc = acc + jnp.dot(w1_ref[a * kq + b], tap,
                                preferred_element_type=jnp.float32)

    # Folded BN1 bias + ReLU6 (f32 post-ops).
    h = jnp.clip(acc + b1_ref[...], 0.0, 6.0)

    # 1×1 pointwise conv at native bf16 MXU rate, f32 accumulate.
    out = jnp.dot(wp_ref[...], h.astype(jnp.bfloat16),
                  preferred_element_type=jnp.float32)
    out = out + b2_ref[...]

    if resid_off is not None:
        # Residual = centre tap of the tile already resident in VMEM.
        out = out + x[:, resid_off:resid_off + tile_len].astype(jnp.float32)

    o_ref[0] = out.astype(o_ref.dtype)


def fused_mbconv(x_nchw, w1, bn1, wp, bn2, *, k, s):
    """x_nchw: (N, Cin, H, W); w1: (F, Cin, k, k); wp: (Oup, F, 1, 1).
    bn1/bn2: tuples (gamma, beta, running_mean, running_var, eps).
    Returns (N, Oup, Hout, Wout), matching the PyTorch module (eval-mode BN)."""
    N, cin, H, W = x_nchw.shape
    feat = w1.shape[0]
    oup = wp.shape[0]
    p = k // 2
    Hout = (H + 2 * p - k) // s + 1
    Wout = (W + 2 * p - k) // s + 1
    use_residual = (s == 1 and cin == oup)

    # Fold BN scales into the conv weights; only biases remain for the kernel.
    scale1, bias1 = _fold_bn(*bn1)
    scale2, bias2 = _fold_bn(*bn2)
    w1f = w1 * scale1[:, None, None, None]
    wpf = wp.reshape(oup, feat) * scale2[:, None]

    # 'same' geometric padding once (the only wrapper-side activation pass).
    xp = jnp.pad(x_nchw, ((0, 0), (0, 0), (p, p), (p, p)))

    # Reduce to a stride-1 problem (space-to-depth for s > 1).
    if s == 1:
        xq, w1q, kq, cq = xp, w1f, k, cin
    else:
        # TODO(synk): the s>1 space-to-depth path is implemented but not
        # exercised by the test below (module default is s=1).
        kq = -(-k // s)
        hp_, wp_ = xp.shape[2], xp.shape[3]
        hq_, wq_ = -(-hp_ // s), -(-wp_ // s)
        xpp = jnp.pad(xp, ((0, 0), (0, 0), (0, hq_ * s - hp_), (0, wq_ * s - wp_)))
        xq = xpp.reshape(N, cin, hq_, s, wq_, s).transpose(0, 1, 3, 5, 2, 4)
        xq = xq.reshape(N, cin * s * s, hq_, wq_)
        w1p = jnp.pad(w1f, ((0, 0), (0, 0), (0, kq * s - k), (0, kq * s - k)))
        w1q = w1p.reshape(feat, cin, kq, s, kq, s).transpose(0, 1, 3, 5, 2, 4)
        w1q = w1q.reshape(feat, cin * s * s, kq, kq)
        cq = cin * s * s
    hq_avail, wq0 = xq.shape[2], xq.shape[3]

    # ---- row-tile selection under a hardware-aware VMEM budget ----
    out_bytes = jnp.dtype(x_nchw.dtype).itemsize
    vmem_cap = _vmem_capacity_bytes()
    budget = int(0.4 * vmem_cap)

    def padded_width(th, t):
        if t == 1:
            return wq0
        m = 128 // math.gcd(th, 128)          # keeps the out-block lane-dense
        return -(-wq0 // m) * m

    def tile_vmem(th):
        t = -(-Hout // th)
        wqp_ = padded_width(th, t)
        tl = th * wqp_
        x_blk = cq * (th + kq) * wqp_ * 2          # bf16 activation tile
        o_blk = oup * tl * out_bytes               # output tile
        w_all = (kq * kq * feat * cq + oup * feat) * 2 + (feat + oup) * 4
        work = (feat + cq + oup) * tl * 4          # acc + temporaries (f32)
        return 2 * (x_blk + o_blk + w_all) + work  # ×2: double-buffering

    cands = sorted({Hout} | {m for m in (64, 48, 32, 24, 16, 8) if m < Hout},
                   reverse=True)
    fitting = [c for c in cands if tile_vmem(c) <= budget] or [cands[-1]]
    th = fitting[-1]                         # most grid steps as fallback
    for c in fitting:                        # largest tile that still gives a
        if N * (-(-Hout // c)) >= 4:         # few steps for pipeline/megacore
            th = c
            break
    T = -(-Hout // th)
    wqp = padded_width(th, T)
    rh = th + kq                 # halo'd rows per tile (+1 spare row so every
                                 # tap is a constant in-bounds flat shift)
    tile_len = th * wqp

    # Pad xq so every tile slice exists, then build halo-duplicated tiles
    # (duplication ~ kq/th of the input — vs k²× for im2col).
    rows_needed = (T - 1) * th + rh
    xq = jnp.pad(xq, ((0, 0), (0, 0),
                      (0, max(0, rows_needed - hq_avail)),
                      (0, wqp - wq0)))
    xt = jnp.stack([xq[:, :, t * th:t * th + rh, :] for t in range(T)], axis=1)
    xt = xt.reshape(N, T, cq, rh * wqp).astype(jnp.bfloat16)

    # Weights: per-tap (F, Cq) matrices in (dy, dx) order; all bf16.
    w1_taps = jnp.transpose(w1q, (2, 3, 0, 1)).reshape(kq * kq, feat, cq)
    w1_taps = w1_taps.astype(jnp.bfloat16)
    wpm = wpf.astype(jnp.bfloat16)
    b1 = bias1.reshape(feat, 1).astype(jnp.float32)
    b2 = bias2.reshape(oup, 1).astype(jnp.float32)

    kernel = functools.partial(
        _fused_mbconv_kernel, kq=kq, tile_len=tile_len, wq=wqp,
        resid_off=(p * wqp + p) if use_residual else None)

    vmem_limit = min(int(0.9 * vmem_cap),
                     max(2 * tile_vmem(th), 32 * 1024 * 1024))

    # NOTE: the weight/bias blocks are grid-invariant; default double-buffering
    # only costs a few KiB here, so we keep it for portability instead of
    # pl.Buffered(1).
    out_flat = pl.pallas_call(
        kernel,
        out_shape=jax.ShapeDtypeStruct((N, oup, T * tile_len), x_nchw.dtype),
        grid_spec=pltpu.PrefetchScalarGridSpec(
            num_scalar_prefetch=0,
            grid=(N, T),
            in_specs=[
                pl.BlockSpec((1, 1, cq, rh * wqp), lambda n, t: (n, t, 0, 0)),
                pl.BlockSpec((kq * kq, feat, cq), lambda n, t: (0, 0, 0)),
                pl.BlockSpec((feat, 1), lambda n, t: (0, 0)),
                pl.BlockSpec((oup, feat), lambda n, t: (0, 0)),
                pl.BlockSpec((oup, 1), lambda n, t: (0, 0)),
            ],
            out_specs=pl.BlockSpec((1, oup, tile_len), lambda n, t: (n, 0, t)),
        ),
        compiler_params=pltpu.CompilerParams(
            dimension_semantics=("parallel", "parallel"),
            vmem_limit_bytes=vmem_limit),
    )(xt, w1_taps, b1, wpm, b2)

    # Strip the junk padded-width columns / padded rows (cheap wrapper slice;
    # the kernel's HBM store itself stays lane-dense).
    out = out_flat.reshape(N, oup, T * th, wqp)[:, :, :Hout, :Wout]
    return out


def _reference(x_nchw, w1, bn1, wp, bn2, *, k, s):
    """Pure-JAX f32 reference (eval-mode BN) for correctness checking."""
    N, cin, H, W = x_nchw.shape
    oup = wp.shape[0]
    pad = k // 2
    scale1, bias1 = _fold_bn(*bn1)
    scale2, bias2 = _fold_bn(*bn2)
    x = jnp.transpose(x_nchw, (0, 2, 3, 1))
    y = lax.conv_general_dilated(
        x, jnp.transpose(w1, (2, 3, 1, 0)),
        window_strides=(s, s), padding=[(pad, pad), (pad, pad)],
        dimension_numbers=('NHWC', 'HWIO', 'NHWC'))
    y = y * scale1 + bias1
    y = jnp.clip(y, 0.0, 6.0)
    y = jnp.einsum('nhwc,oc->nhwo', y, wp.reshape(oup, -1))
    y = y * scale2 + bias2
    if s == 1 and cin == oup:
        y = y + x
    return jnp.transpose(y, (0, 3, 1, 2))


if __name__ == "__main__":
    # Module config: FusedMBConv(inp=4, oup=4, s=1, k=3, r=4) -> feature_dim = 16
    inp, oup, stride, k, r = 4, 4, 1, 3, 4
    feat = _make_divisible(round(inp * r), 8)

    N, H, W = 2, 16, 16
    key = jax.random.PRNGKey(0)
    ks = jax.random.split(key, 11)

    x = jax.random.normal(ks[0], (N, inp, H, W), jnp.float32)
    w1 = 0.1 * jax.random.normal(ks[1], (feat, inp, k, k), jnp.float32)
    wp = 0.1 * jax.random.normal(ks[2], (oup, feat, 1, 1), jnp.float32)

    # Deterministic BN params (eval-mode / running stats).
    # TODO(synk): train-mode BatchNorm (batch statistics) is not implemented;
    # eval-mode (running stats) semantics are used.
    eps = 1e-5
    bn1 = (1.0 + 0.1 * jax.random.normal(ks[3], (feat,), jnp.float32),
           0.1 * jax.random.normal(ks[4], (feat,), jnp.float32),
           0.05 * jax.random.normal(ks[5], (feat,), jnp.float32),
           1.0 + 0.1 * jnp.abs(jax.random.normal(ks[6], (feat,), jnp.float32)),
           eps)
    bn2 = (1.0 + 0.1 * jax.random.normal(ks[7], (oup,), jnp.float32),
           0.1 * jax.random.normal(ks[8], (oup,), jnp.float32),
           0.05 * jax.random.normal(ks[9], (oup,), jnp.float32),
           1.0 + 0.1 * jnp.abs(jax.random.normal(ks[10], (oup,), jnp.float32)),
           eps)

    out = fused_mbconv(x, w1, bn1, wp, bn2, k=k, s=stride)
    out = jax.block_until_ready(out)

    ref = _reference(x, w1, bn1, wp, bn2, k=k, s=stride)
    assert out.shape == ref.shape == (N, oup, H, W), (out.shape, ref.shape)
    # bf16 matmul operands (per perf review) -> widened tolerance vs f32 ref.
    max_err = float(jnp.max(jnp.abs(out - ref)))
    rms_err = float(jnp.sqrt(jnp.mean((out - ref) ** 2)))
    assert max_err < 1e-1 and rms_err < 2e-2, (max_err, rms_err)

    print("KERNEL_OK")
</pallas_src>

<mosaic_0001>
module attributes {stable_mosaic.version = 11 : i64} {
  func.func @_fused_mbconv_kernel(%arg0: i32, %arg1: i32, %arg2: memref<1x1x4x352xbf16, #tpu.memory_space<vmem>>, %arg3: memref<9x16x4xbf16, #tpu.memory_space<vmem>>, %arg4: memref<16x1xf32, #tpu.memory_space<vmem>>, %arg5: memref<4x16xbf16, #tpu.memory_space<vmem>>, %arg6: memref<4x1xf32, #tpu.memory_space<vmem>>, %arg7: memref<1x4x256xf32, #tpu.memory_space<vmem>>) attributes {dimension_semantics = [#tpu.dimension_semantics<parallel>, #tpu.dimension_semantics<parallel>], iteration_bounds = array<i64: 2, 2>, scalar_prefetch = 0 : i64, scratch_operands = 0 : i64, tpu.core_type = #tpu.core_type<tc>, window_params = [{transform_indices = @transform_0, window_bounds = array<i64: 1, 1, 4, 352>}, {pipeline_mode = #tpu.pipeline_mode<synchronous>, transform_indices = @transform_1, window_bounds = array<i64: 9, 16, 4>}, {pipeline_mode = #tpu.pipeline_mode<synchronous>, transform_indices = @transform_2, window_bounds = array<i64: 16, 1>}, {pipeline_mode = #tpu.pipeline_mode<synchronous>, transform_indices = @transform_3, window_bounds = array<i64: 4, 16>}, {pipeline_mode = #tpu.pipeline_mode<synchronous>, transform_indices = @transform_4, window_bounds = array<i64: 4, 1>}, {transform_indices = @transform_5, window_bounds = array<i64: 1, 4, 256>}]} {
    %c0 = arith.constant 0 : index
    %c0_0 = arith.constant 0 : index
    %c0_1 = arith.constant 0 : index
    %c0_2 = arith.constant 0 : index
    %0 = vector.load %arg2[%c0, %c0_0, %c0_1, %c0_2] : memref<1x1x4x352xbf16, #tpu.memory_space<vmem>>, vector<1x1x4x352xbf16>
    %1 = vector.shape_cast %0 : vector<1x1x4x352xbf16> to vector<4x352xbf16>
    %cst = arith.constant 0.000000e+00 : f32
    %2 = vector.broadcast %cst : f32 to vector<16x256xf32>
    %3 = vector.extract_strided_slice %1 {offsets = [0, 0], sizes = [4, 256], strides = [1, 1]} : vector<4x352xbf16> to vector<4x256xbf16>
    %c0_3 = arith.constant 0 : index
    %c0_4 = arith.constant 0 : index
    %c0_5 = arith.constant 0 : index
    %4 = vector.load %arg3[%c0_3, %c0_4, %c0_5] : memref<9x16x4xbf16, #tpu.memory_space<vmem>>, vector<1x16x4xbf16>
    %5 = vector.shape_cast %4 : vector<1x16x4xbf16> to vector<16x4xbf16>
    %cst_6 = arith.constant dense<0.000000e+00> : vector<16x256xf32>
    %6 = tpu.matmul %5, %3, %cst_6 {dimension_numbers = #tpu.dot_dimension_numbers<[1], [0], [0], [1], [0, 0, 1, 1], [], []>} : vector<16x4xbf16>, vector<4x256xbf16>, vector<16x256xf32> -> vector<16x256xf32>
    %7 = arith.addf %2, %6 : vector<16x256xf32>
    %8 = vector.extract_strided_slice %1 {offsets = [0, 1], sizes = [4, 256], strides = [1, 1]} : vector<4x352xbf16> to vector<4x256xbf16>
    %c1 = arith.constant 1 : index
    %c0_7 = arith.constant 0 : index
    %c0_8 = arith.constant 0 : index
    %9 = vector.load %arg3[%c1, %c0_7, %c0_8] : memref<9x16x4xbf16, #tpu.memory_space<vmem>>, vector<1x16x4xbf16>
    %10 = vector.shape_cast %9 : vector<1x16x4xbf16> to vector<16x4xbf16>
    %cst_9 = arith.constant dense<0.000000e+00> : vector<16x256xf32>
    %11 = tpu.matmul %10, %8, %cst_9 {dimension_numbers = #tpu.dot_dimension_numbers<[1], [0], [0], [1], [0, 0, 1, 1], [], []>} : vector<16x4xbf16>, vector<4x256xbf16>, vector<16x256xf32> -> vector<16x256xf32>
    %12 = arith.addf %7, %11 : vector<16x256xf32>
    %13 = vector.extract_strided_slice %1 {offsets = [0, 2], sizes = [4, 256], strides = [1, 1]} : vector<4x352xbf16> to vector<4x256xbf16>
    %c2 = arith.constant 2 : index
    %c0_10 = arith.constant 0 : index
    %c0_11 = arith.constant 0 : index
    %14 = vector.load %arg3[%c2, %c0_10, %c0_11] : memref<9x16x4xbf16, #tpu.memory_space<vmem>>, vector<1x16x4xbf16>
    %15 = vector.shape_cast %14 : vector<1x16x4xbf16> to vector<16x4xbf16>
    %cst_12 = arith.constant dense<0.000000e+00> : vector<16x256xf32>
    %16 = tpu.matmul %15, %13, %cst_12 {dimension_numbers = #tpu.dot_dimension_numbers<[1], [0], [0], [1], [0, 0, 1, 1], [], []>} : vector<16x4xbf16>, vector<4x256xbf16>, vector<16x256xf32> -> vector<16x256xf32>
    %17 = arith.addf %12, %16 : vector<16x256xf32>
    %18 = vector.extract_strided_slice %1 {offsets = [0, 32], sizes = [4, 256], strides = [1, 1]} : vector<4x352xbf16> to vector<4x256xbf16>
    %c3 = arith.constant 3 : index
    %c0_13 = arith.constant 0 : index
    %c0_14 = arith.constant 0 : index
    %19 = vector.load %arg3[%c3, %c0_13, %c0_14] : memref<9x16x4xbf16, #tpu.memory_space<vmem>>, vector<1x16x4xbf16>
    %20 = vector.shape_cast %19 : vector<1x16x4xbf16> to vector<16x4xbf16>
    %cst_15 = arith.constant dense<0.000000e+00> : vector<16x256xf32>
    %21 = tpu.matmul %20, %18, %cst_15 {dimension_numbers = #tpu.dot_dimension_numbers<[1], [0], [0], [1], [0, 0, 1, 1], [], []>} : vector<16x4xbf16>, vector<4x256xbf16>, vector<16x256xf32> -> vector<16x256xf32>
    %22 = arith.addf %17, %21 : vector<16x256xf32>
    %23 = vector.extract_strided_slice %1 {offsets = [0, 33], sizes = [4, 256], strides = [1, 1]} : vector<4x352xbf16> to vector<4x256xbf16>
    %c4 = arith.constant 4 : index
    %c0_16 = arith.constant 0 : index
    %c0_17 = arith.constant 0 : index
    %24 = vector.load %arg3[%c4, %c0_16, %c0_17] : memref<9x16x4xbf16, #tpu.memory_space<vmem>>, vector<1x16x4xbf16>
    %25 = vector.shape_cast %24 : vector<1x16x4xbf16> to vector<16x4xbf16>
    %cst_18 = arith.constant dense<0.000000e+00> : vector<16x256xf32>
    %26 = tpu.matmul %25, %23, %cst_18 {dimension_numbers = #tpu.dot_dimension_numbers<[1], [0], [0], [1], [0, 0, 1, 1], [], []>} : vector<16x4xbf16>, vector<4x256xbf16>, vector<16x256xf32> -> vector<16x256xf32>
    %27 = arith.addf %22, %26 : vector<16x256xf32>
    %28 = vector.extract_strided_slice %1 {offsets = [0, 34], sizes = [4, 256], strides = [1, 1]} : vector<4x352xbf16> to vector<4x256xbf16>
    %c5 = arith.constant 5 : index
    %c0_19 = arith.constant 0 : index
    %c0_20 = arith.constant 0 : index
    %29 = vector.load %arg3[%c5, %c0_19, %c0_20] : memref<9x16x4xbf16, #tpu.memory_space<vmem>>, vector<1x16x4xbf16>
    %30 = vector.shape_cast %29 : vector<1x16x4xbf16> to vector<16x4xbf16>
    %cst_21 = arith.constant dense<0.000000e+00> : vector<16x256xf32>
    %31 = tpu.matmul %30, %28, %cst_21 {dimension_numbers = #tpu.dot_dimension_numbers<[1], [0], [0], [1], [0, 0, 1, 1], [], []>} : vector<16x4xbf16>, vector<4x256xbf16>, vector<16x256xf32> -> vector<16x256xf32>
    %32 = arith.addf %27, %31 : vector<16x256xf32>
    %33 = vector.extract_strided_slice %1 {offsets = [0, 64], sizes = [4, 256], strides = [1, 1]} : vector<4x352xbf16> to vector<4x256xbf16>
    %c6 = arith.constant 6 : index
    %c0_22 = arith.constant 0 : index
    %c0_23 = arith.constant 0 : index
    %34 = vector.load %arg3[%c6, %c0_22, %c0_23] : memref<9x16x4xbf16, #tpu.memory_space<vmem>>, vector<1x16x4xbf16>
    %35 = vector.shape_cast %34 : vector<1x16x4xbf16> to vector<16x4xbf16>
    %cst_24 = arith.constant dense<0.000000e+00> : vector<16x256xf32>
    %36 = tpu.matmul %35, %33, %cst_24 {dimension_numbers = #tpu.dot_dimension_numbers<[1], [0], [0], [1], [0, 0, 1, 1], [], []>} : vector<16x4xbf16>, vector<4x256xbf16>, vector<16x256xf32> -> vector<16x256xf32>
    %37 = arith.addf %32, %36 : vector<16x256xf32>
    %38 = vector.extract_strided_slice %1 {offsets = [0, 65], sizes = [4, 256], strides = [1, 1]} : vector<4x352xbf16> to vector<4x256xbf16>
    %c7 = arith.constant 7 : index
    %c0_25 = arith.constant 0 : index
    %c0_26 = arith.constant 0 : index
    %39 = vector.load %arg3[%c7, %c0_25, %c0_26] : memref<9x16x4xbf16, #tpu.memory_space<vmem>>, vector<1x16x4xbf16>
    %40 = vector.shape_cast %39 : vector<1x16x4xbf16> to vector<16x4xbf16>
    %cst_27 = arith.constant dense<0.000000e+00> : vector<16x256xf32>
    %41 = tpu.matmul %40, %38, %cst_27 {dimension_numbers = #tpu.dot_dimension_numbers<[1], [0], [0], [1], [0, 0, 1, 1], [], []>} : vector<16x4xbf16>, vector<4x256xbf16>, vector<16x256xf32> -> vector<16x256xf32>
    %42 = arith.addf %37, %41 : vector<16x256xf32>
    %43 = vector.extract_strided_slice %1 {offsets = [0, 66], sizes = [4, 256], strides = [1, 1]} : vector<4x352xbf16> to vector<4x256xbf16>
    %c8 = arith.constant 8 : index
    %c0_28 = arith.constant 0 : index
    %c0_29 = arith.constant 0 : index
    %44 = vector.load %arg3[%c8, %c0_28, %c0_29] : memref<9x16x4xbf16, #tpu.memory_space<vmem>>, vector<1x16x4xbf16>
    %45 = vector.shape_cast %44 : vector<1x16x4xbf16> to vector<16x4xbf16>
    %cst_30 = arith.constant dense<0.000000e+00> : vector<16x256xf32>
    %46 = tpu.matmul %45, %43, %cst_30 {dimension_numbers = #tpu.dot_dimension_numbers<[1], [0], [0], [1], [0, 0, 1, 1], [], []>} : vector<16x4xbf16>, vector<4x256xbf16>, vector<16x256xf32> -> vector<16x256xf32>
    %47 = arith.addf %42, %46 : vector<16x256xf32>
    %c0_31 = arith.constant 0 : index
    %c0_32 = arith.constant 0 : index
    %48 = vector.load %arg4[%c0_31, %c0_32] : memref<16x1xf32, #tpu.memory_space<vmem>>, vector<16x1xf32>
    %49 = vector.broadcast %48 : vector<16x1xf32> to vector<16x256xf32>
    %50 = arith.addf %47, %49 : vector<16x256xf32>
    %cst_33 = arith.constant 0.000000e+00 : f32
    %cst_34 = arith.constant 6.000000e+00 : f32
    %51 = vector.broadcast %cst_33 : f32 to vector<16x256xf32>
    %52 = arith.maximumf %51, %50 : vector<16x256xf32>
    %53 = vector.broadcast %cst_34 : f32 to vector<16x256xf32>
    %54 = arith.minimumf %53, %52 : vector<16x256xf32>
    %c0_35 = arith.constant 0 : index
    %c0_36 = arith.constant 0 : index
    %55 = vector.load %arg5[%c0_35, %c0_36] : memref<4x16xbf16, #tpu.memory_space<vmem>>, vector<4x16xbf16>
    %56 = arith.truncf %54 : vector<16x256xf32> to vector<16x256xbf16>
    %cst_37 = arith.constant dense<0.000000e+00> : vector<4x256xf32>
    %57 = tpu.matmul %55, %56, %cst_37 {dimension_numbers = #tpu.dot_dimension_numbers<[1], [0], [0], [1], [0, 0, 1, 1], [], []>} : vector<4x16xbf16>, vector<16x256xbf16>, vector<4x256xf32> -> vector<4x256xf32>
    %c0_38 = arith.constant 0 : index
    %c0_39 = arith.constant 0 : index
    %58 = vector.load %arg6[%c0_38, %c0_39] : memref<4x1xf32, #tpu.memory_space<vmem>>, vector<4x1xf32>
    %59 = vector.broadcast %58 : vector<4x1xf32> to vector<4x256xf32>
    %60 = arith.addf %57, %59 : vector<4x256xf32>
    %61 = vector.extract_strided_slice %1 {offsets = [0, 33], sizes = [4, 256], strides = [1, 1]} : vector<4x352xbf16> to vector<4x256xbf16>
    %62 = arith.extf %61 : vector<4x256xbf16> to vector<4x256xf32>
    %63 = arith.addf %60, %62 : vector<4x256xf32>
    %c0_40 = arith.constant 0 : index
    %c0_41 = arith.constant 0 : index
    %c0_42 = arith.constant 0 : index
    %64 = vector.load %arg7[%c0_40, %c0_41, %c0_42] : memref<1x4x256xf32, #tpu.memory_space<vmem>>, vector<1x4x256xf32>
    %65 = vector.shape_cast %64 : vector<1x4x256xf32> to vector<4x256xf32>
    %66 = vector.shape_cast %63 : vector<4x256xf32> to vector<1x4x256xf32>
    tpu.vector_store %arg7[%c0_40, %c0_41, %c0_42], %66 {strides = array<i32>} : memref<1x4x256xf32, #tpu.memory_space<vmem>>, vector<1x4x256xf32>,
    return
  }
  func.func @transform_0(%arg0: i32, %arg1: i32) -> (i32, i32, i32, i32) {
    %c0_i32 = arith.constant 0 : i32
    %c0_i32_0 = arith.constant 0 : i32
    %c0_i32_1 = arith.constant 0 : i32
    return %arg0, %arg1, %c0_i32, %c0_i32_0 : i32, i32, i32, i32
  }
  func.func @transform_1(%arg0: i32, %arg1: i32) -> (i32, i32, i32) {
    %c0_i32 = arith.constant 0 : i32
    %c0_i32_0 = arith.constant 0 : i32
    %c0_i32_1 = arith.constant 0 : i32
    %c0_i32_2 = arith.constant 0 : i32
    return %c0_i32, %c0_i32_0, %c0_i32_1 : i32, i32, i32
  }
  func.func @transform_2(%arg0: i32, %arg1: i32) -> (i32, i32) {
    %c0_i32 = arith.constant 0 : i32
    %c0_i32_0 = arith.constant 0 : i32
    %c0_i32_1 = arith.constant 0 : i32
    return %c0_i32, %c0_i32_0 : i32, i32
  }
  func.func @transform_3(%arg0: i32, %arg1: i32) -> (i32, i32) {
    %c0_i32 = arith.constant 0 : i32
    %c0_i32_0 = arith.constant 0 : i32
    %c0_i32_1 = arith.constant 0 : i32
    return %c0_i32, %c0_i32_0 : i32, i32
  }
  func.func @transform_4(%arg0: i32, %arg1: i32) -> (i32, i32) {
    %c0_i32 = arith.constant 0 : i32
    %c0_i32_0 = arith.constant 0 : i32
    %c0_i32_1 = arith.constant 0 : i32
    return %c0_i32, %c0_i32_0 : i32, i32
  }
  func.func @transform_5(%arg0: i32, %arg1: i32) -> (i32, i32, i32) {
    %c0_i32 = arith.constant 0 : i32
    %c0_i32_0 = arith.constant 0 : i32
    return %arg0, %c0_i32, %arg1 : i32, i32, i32
  }
}

</mosaic_0001>

<bundles_post_ra>
// kernel: tpu_custom_call.1
= control target key start
LH: loop header
LB: loop body
LE: loop exit
PB: predicated region body
PF: predicated region fallthrough
CT: control target
= control target key end

     0   :  { %10 = vsyncpa [#allocation3], 0  ;;  %s1693_s0 = inlined_call_operand.vmem [shape: bf16[2,2,4,352], index: 0, kind: input, shape index: {}]   ;;  %s1694_s1 = inlined_call_operand.vmem [shape: bf16[9,16,4], index: 1, kind: input, shape index: {}]   ;;  %s1695_s2 = inlined_call_operand.vmem [shape: f32[16,1], index: 2, kind: input, shape index: {}]   ;;  %s1696_s3 = inlined_call_operand.vmem [shape: bf16[4,16], index: 3, kind: input, shape index: {}]   ;;  %s1697_s4 = inlined_call_operand.vmem [shape: f32[4,1], index: 4, kind: input, shape index: {}]   ;;  %s1698_s5 = inlined_call_operand.hbm [shape: f32[2,4,512], index: 5, kind: output, shape index: {}]  }
   0x1   :  { %12 = vsyncpa [#allocation3 + $0x1], 0  ;;  %s1438_s18 = smov 0   ;;  %s1440_s19 = smov 0  }
   0x2   :  { %s1442_s20 = smov 0   ;;  %s1444_s21 = smov 0  }
   0x3   :  { %s1446_s22 = smov 0   ;;  %s1448_s23 = smov 0  }
   0x4   :  { %s1450_s24 = smov 0   ;;  %s1452_s25 = smov 0  }
   0x5 LB: > { %s1112_s26 = sadd.s32 4294967295, %s1395_s25   ;;  %s1113_s27 = sadd.s32 4294967294, %s1395_s25   ;;  %s1395_s25 = sphi %s1452_s25, %s18_s25   ;;  %s1391_s24 = sphi %s1450_s24, %s1707_s24   ;;  %s1387_s23 = sphi %s1448_s23, %s1706_s23   ;;  %s1383_s22 = sphi %s1446_s22, %s1705_s22   ;;  %s1379_s21 = sphi %s1444_s21, %s1704_s21   ;;  %s1375_s20 = sphi %s1442_s20, %s1703_s20   ;;  %s1371_s19 = sphi %s1440_s19, %s1702_s19   ;;  %s1367_s18 = sphi %s1438_s18, %s1701_s18  }
   0x6   : > { %s27_s28 = sadd.s32 1, %s1387_s23  ;;  %s30_s29 = sadd.s32 1, %s1391_s24 }
   0x7   : > { %p28_p0 = scmp.ge.s32.totalorder %s27_s28, 2  ;;  %p161_p1 = scmp.ne.s32.totalorder %s1375_s20, %s1371_s19 }
   0x8   : > { %p162_p2 = scmp.eq.s32.totalorder %s1112_s26, 3  ;;  %p167_p5 = scmp.ne.s32.totalorder %s1371_s19, %s1367_s18 }
   0x9   : > { %s1709_s28 = smov (%p28_p0, %s27_s28), 0  ;;  %s1711_s29 = smov (!%p28_p0, %s30_s29), %s1391_s24 }
   0xa   : > { %s147_s30 = ssub.s32 %s1387_s23, %s1709_s28  ;;  %p1489_p3 = por %p162_p2, %p161_p1 }
   0xb   : > { %p32_p4 = scmp.ge.s32.totalorder %s1711_s29, 2  ;;  %p168_p6 = scmp.eq.s32.totalorder %s1113_s27, 3 }
   0xc   : > { %p1116_p7 = scmp.ge.s32.totalorder %s1395_s25, 1  ;;  %p210_p9 = scmp.lt.s32.totalorder %s1395_s25, 5 }
   0xd   : > { %s1713_s29 = smov (%p32_p4, %s1711_s29), 0  ;;  %p1498_p8 = por %p168_p6, %p167_p5 }
   0xe   : > { %s146_s8 = ssub.s32 %s1391_s24, %s1713_s29  ;;  %s151_s9 = sadd.s32 1, %s1375_s20 }
   0xf   : > { %s148_s10 = sor.u32 %s147_s30, %s146_s8  ;;  %p211_p10 = pnand %p1116_p7, %p210_p9 }
  0x10   : > { %p149_p11 = scmp.eq.s32.totalorder %s148_s10, 0  ;;  %p242_p12 = scmp.lt.s32.totalorder (!%p211_p10), %s1383_s22, 1  ;;  %v269_v0 = vlaneseq (!%p211_p10)  ;;  %v1397_v1 = vmov (!%p211_p10), 1983009808   ;;  %v1398_v6 = vmov (!%p211_p10), 0   ;;  %v912_v12 = vld [vmem:[%s1695_s2] sm:$0xff] (!%p211_p10) }
  0x11   : > { %214 = sbr.rel (%p211_p10) target bundleno = 669 (0x29d), region = 40  ;;  %p244_p13 = scmp.lt.s32.totalorder (!%p211_p10), %s1379_s21, 1  ;;  %v267_v2 = vunpack.c.l.s4 (!%p211_p10), %v1397_v1  ;;  %605 = vmatprep.mubr.bf16.mxu0 (!%p211_p10), %v1398_v6  ;;  %333 = vmatprep.mubr.bf16.mxu1 (!%p211_p10), %v1398_v6  ;;  %v913_v13 = vld [vmem:[%s1695_s2 + $0x8] sm:$0xff] (!%p211_p10)  ;;  %v939_v14 = vld [vmem:[%s1697_s4] sm:$0xf] (!%p211_p10)  ;;  %vm561_vm0 = vcmask (!%p211_p10), 777216  }
  0x12   : > { %s1507_s11 = scalar_select %p149_p11, %s1375_s20, %s151_s9  }
  0x13   : > { %v268_v3 = vunpack.c.0.s8 (!%p211_p10), %v267_v2  ;;  %v270_v4 = vshrl.u32 (!%p211_p10), %v269_v0, 7  ;;  %1284 = vset.pattern.permute.xlu0 (!%p211_p10), %v1398_v6  ;;  %1285 = vset.pattern.permute.xlu1 (!%p211_p10), %v1398_v6  ;;  %s1399_s8 = smov (!%p211_p10), 95   ;;  %s1400_s9 = smov (!%p211_p10), 127   ;;  %vm294_vm1 = vcmask (!%p211_p10), 1041408   ;;  %v1292_v22 = vld [vmem:[%s1694_s1 + $0x20] sm:$0xff] (!%p211_p10)   ;;  %vm290_vm2 = vcmask (!%p211_p10), 31744  }
  0x14   : > { %s1401_s10 = smov (!%p211_p10), 94   ;;  %vm287_vm3 = vcmask (!%p211_p10), 1039360   ;;  %vm634_vm4 = vcmask (!%p211_p10), 769024   ;;  %v1293_v30 = vld [vmem:[%s1694_s1 + $0x8] sm:$0xff] (!%p211_p10)   ;;  %vm707_vm5 = vcmask (!%p211_p10), 523264   ;;  %vm415_vm6 = vcmask (!%p211_p10), 1031168  }
  0x15   : > { %v271_v5 = vsub.s32 (!%p211_p10), %v268_v3, %v270_v4  ;;  %v1294_v37 = vld [vmem:[%s1694_s1 + $0x28] sm:$0xff] (!%p211_p10)   ;;  %v1295_v45 = vld [vmem:[%s1694_s1] sm:$0xff] (!%p211_p10)   ;;  %v1296_v51 = vld [vmem:[%s1694_s1 + $0x30] sm:$0xff] (!%p211_p10)   ;;  %vm780_vm7 = vcmask (!%p211_p10), 515072   ;;  %vm488_vm8 = vcmask (!%p211_p10), 785408   ;;  %vm853_vm9 = vcmask (!%p211_p10), 506880  }
  0x16   : > { %v1297_v59 = vld [vmem:[%s1694_s1 + $0x10] sm:$0xff] (!%p211_p10)   ;;  %v1298_v1 = vld [vmem:[%s1694_s1 + $0x38] sm:$0xff] (!%p211_p10)   ;;  %vm945_vm10 = vcmask (!%p211_p10), 130048   ;;  %s1407_s27 = smov (!%p211_p10), [#allocation2]  }
  0x18   : > { %s243_s12 = scalar_select %p242_p12, %s1383_s22, 1 }
  0x19   : > { %s245_s13 = scalar_select %p244_p13, %s1379_s21, 1 }
  0x1a   : > { %s1202_s14 = smul.u32 6, %s243_s12  ;;  %s1402_s12 = smov 64  }
  0x1b   : > { %s1201_s15 = smul.u32 3, %s245_s13  ;;  %s1403_s13 = smov 126  }
  0x1d   : > { %s248_s16 = sadd.s32 %s1202_s14, %s1201_s15  ;;  %s1404_s14 = smov 63  }
  0x1e   : > { %s1118_s17 = sshll.u32 %s248_s16, 1  ;;  %s1405_s15 = smov 96  }
  0x1f   : > { %s250_s30 = scalar_lea.vmem %s1693_s0, %s1118_s17  ;;  %s1406_s16 = smov 62  }
  0x20   : > { %v1520_v7 = vld [vmem:[%s250_s30] sm:$0x3f]  ;;  %s239_s30 = sand.u32 1, %s1371_s19  }
  0x21   : > { %v1523_v8 = vrot.slane %v1520_v7, %v271_v5  ;;  %v265_v9 = vcombine.high %v1520_v7, %v1520_v7  ;;  %s1014_s26 = scalar_lea.sflag [#allocation3], %s239_s30 }
  0x23   : > { %555 = vrot.lane.b32.xlu0 %v1523_v8, %s1399_s8  ;;  %v279_v10 = vrot.slane %v265_v9, %v271_v5  ;;  %v1531_v11 = vcombine.high %v1523_v8, %v1523_v8  ;;  %v353_v33 = vsel %vm294_vm1, %v1523_v8, 0  ;;  %v1299_v9 = vld [vmem:[%s1694_s1 + $0x18] sm:$0xff]  }
  0x25   : > { %559 = vrot.lane.b32.xlu1 %v279_v10, %s1399_s8 }
  0x27   : > { %557 = vrot.lane.b32.xlu0 %v1531_v11, %s1399_s8 }
  0x29   : > { %281 = vrot.lane.b32.xlu1 %v1523_v8, %s1400_s9 }
  0x2b   : > { %628 = vrot.lane.b32.xlu0 %v1523_v8, %s1401_s10 }
  0x2d   : > { %285 = vrot.lane.b32.xlu1 %v279_v10, %s1400_s9 }
  0x2f   : > { %283 = vrot.lane.b32.xlu0 %v1531_v11, %s1400_s9  ;;  %s1117_s9 = sshll.u32 %s239_s30, 3 }
  0x31   : > { %630 = vrot.lane.b32.xlu1 %v1531_v11, %s1401_s10 }
  0x33   : > { %632 = vrot.lane.b32.xlu0 %v279_v10, %s1401_s10  ;;  %s1164_s10 = sshll.u32 %s1379_s21, 1 }
  0x35   : > { %701 = vrot.lane.b32.xlu1 %v1523_v8, %s1402_s12 }
  0x37   : > { %703 = vrot.lane.b32.xlu0 %v1531_v11, %s1402_s12 }
  0x39   : > { %705 = vrot.lane.b32.xlu1 %v279_v10, %s1402_s12  ;;  %s1165_s12 = sshll.u32 %s1383_s22, 2 }
  0x3b   : > { %409 = vrot.lane.b32.xlu0 %v1523_v8, %s1403_s13 }
  0x3d   : > { %411 = vrot.lane.b32.xlu1 %v1531_v11, %s1403_s13 }
  0x3f   : > { %413 = vrot.lane.b32.xlu0 %v279_v10, %s1403_s13  ;;  %s1026_s13 = sadd.s32 %s1165_s12, %s1164_s10 }
  0x41   : > { %774 = vrot.lane.b32.xlu1 %v1523_v8, %s1404_s14 }
  0x43   : > { %776 = vrot.lane.b32.xlu0 %v1531_v11, %s1404_s14 }
  0x45   : > { %778 = vrot.lane.b32.xlu1 %v279_v10, %s1404_s14  ;;  %s1166_s14 = sshll.u32 %s1026_s13, 6 }
  0x46   : > { %s1640_s17 = scalar_lea.hbm %s1698_s5, %s1166_s14 }
  0x47   : > { %482 = vrot.lane.b32.xlu0 %v1523_v8, %s1405_s15 }
  0x49   : > { %484 = vrot.lane.b32.xlu1 %v1531_v11, %s1405_s15 }
  0x4b   : > { %486 = vrot.lane.b32.xlu0 %v279_v10, %s1405_s15  ;;  %s241_s15 = scalar_lea.vmem [#allocation2], %s1117_s9  ;;  %s1305_s9 = sshll.u32 %s1407_s27, 4  ;;  %s1306_s9 = int_to_ptr.vmem [resolvable:$false] %s1305_s9 }
  0x4c   : > { %s1307_s10 = scalar_lea.vmem %s1306_s9, 256 }
  0x4d   : > { %847 = vrot.lane.b32.xlu1 %v1523_v8, %s1406_s16 }
  0x4f   : > { %849 = vrot.lane.b32.xlu0 %v1531_v11, %s1406_s16 }
  0x51   : > { %851 = vrot.lane.b32.xlu1 %v279_v10, %s1406_s16  ;;  %v1300_v10 = vld [vmem:[%s1694_s1 + $0x40] sm:$0xff]   ;;  %s1030_s16 = sshll.u32 %s241_s15, 4  ;;  %s1642_s16 = int_to_ptr.vmem [resolvable:$true] %s1030_s16 }
  0x52   : > { %p1308_p4 = scmp.lt.s32.totalorder %s1642_s16, %s1306_s9 }
  0x53   : > { %916 = vperm.xlu0 %1284, %v912_v12   ;;  %v991_v12 = vunpack.c.h.bf16 %v1520_v7 }
  0x55   : > { %921 = vperm.xlu1 %1285, %v913_v13  }
  0x59   : > { %942 = vperm.xlu1 %1285, %v939_v14  }
  0x5d   : > { %999 = vrot.lane.b32.xlu1 %v991_v12, %s1399_s8 }
  0x95   : > { %v556_v15 = vpop.permute.xlu0 %555 }
  0x97   : > { %v560_v16 = vpop.permute.xlu1 %559 }
  0x99   : > { %v558_v17 = vpop.permute.xlu0 %557 }
  0x9a   : > { %v563_v18 = vsel %vm561_vm0, %v558_v17, %v560_v16  ;;  %v562_v19 = vsel %vm561_vm0, %v556_v15, %v558_v17 }
  0x9b   : > { %1140 = vmatprep.subr.msk.bf16.mxu0 %vm294_vm1, %v563_v18  ;;  %v282_v20 = vpop.permute.xlu1 %281  ;;  %v568_v21 = vsel %vm294_vm1, %v562_v19, 0 }
  0x9c   : > { %574 = vmatpush1.bf16.msra.mxu0 %v568_v21 }
  0x9d   : > { %v629_v23 = vpop.permute.xlu0 %628 }
  0x9f   : > { %1141 = vmatmul.mubr.msk.bf16.vlgmr.msra.gmra.mrb[0].mxu0 %vm290_vm2, %v1292_v22  ;;  %v286_v24 = vpop.permute.xlu1 %285 }
  0xa0   : > { %678 = vmatprep.mubr.bf16.mxu0 %v1398_v6 }
  0xa1   : > { %v284_v25 = vpop.permute.xlu0 %283 }
  0xa2   : > { %v289_v26 = vsel %vm287_vm3, %v284_v25, %v286_v24  ;;  %v288_v27 = vsel %vm287_vm3, %v282_v20, %v284_v25 }
  0xa3   : > { %1122 = vmatprep.subr.msk.bf16.mxu1 %vm294_vm1, %v289_v26  ;;  %v631_v28 = vpop.permute.xlu1 %630  ;;  %v296_v29 = vsel %vm294_vm1, %v288_v27, 0 }
  0xa4   : > { %v635_v31 = vsel %vm634_vm4, %v629_v23, %v631_v28  ;;  %302 = vmatpush1.bf16.msra.mxu1 %v296_v29 }
  0xa5   : > { %v633_v32 = vpop.permute.xlu0 %632  ;;  %1125 = vmatprep.subr.msk.bf16.mxu1 %vm294_vm1, %v1531_v11  ;;  %v641_v35 = vsel %vm294_vm1, %v635_v31, 0  ;;  %v990_v11 = vunpack.c.l.bf16 %v1520_v7 }
  0xa6   : > { %v636_v34 = vsel %vm634_vm4, %v631_v28, %v633_v32 }
  0xa7   : > { %1123 = vmatmul.mubr.msk.bf16.vlgmr.msra.gmra.mrb[0].mxu1 %vm290_vm2, %v1293_v30  ;;  %1145 = vmatprep.subr.msk.bf16.mxu0 %vm294_vm1, %v636_v34  ;;  %v702_v36 = vpop.permute.xlu1 %701  ;;  %v994_v13 = vcombine.high %v990_v11, %v990_v11 }
  0xa8   : > { %647 = vmatpush1.bf16.msra.mxu0 %v641_v35  ;;  %359 = vmatpush1.bf16.msra.mxu1 %v353_v33 }
  0xa9   : > { %v704_v38 = vpop.permute.xlu0 %703  ;;  %390 = vmatprep.mubr.bf16.mxu1 %v1398_v6  ;;  %v1286_v14 = vpack.i.bf16 %v994_v13, %v990_v11 }
  0xaa   : > { %v708_v39 = vsel %vm707_vm5, %v702_v36, %v704_v38 }
  0xab   : > { %1146 = vmatmul.mubr.msk.bf16.vlgmr.msra.gmra.mrb[0].mxu0 %vm290_vm2, %v1294_v37  ;;  %v714_v40 = vsel %vm294_vm1, %v708_v39, 0  ;;  %v706_v41 = vpop.permute.xlu1 %705  ;;  %1287 = vrot.lane.b32.xlu0 %v1286_v14, %s1399_s8  ;;  %s1301_s8 = scalar_lea.vmem %s1642_s16, 128 }
  0xac   : > { %v709_v42 = vsel %vm707_vm5, %v704_v38, %v706_v41  ;;  %751 = vmatprep.mubr.bf16.mxu0 %v1398_v6  ;;  %v936_v41 = vld [vmem:[%s1696_s3] sm:$0x3]  ;;  %p1302_p0 = scmp.ne.s32.totalorder %s1642_s16, %s1301_s8  ;;  %p1309_p5 = scmp.lt.s32.totalorder %s1307_s10, %s1301_s8 }
  0xad   : > { %1150 = vmatprep.subr.msk.bf16.mxu0 %vm294_vm1, %v709_v42  ;;  %v410_v43 = vpop.permute.xlu0 %409 }
  0xae   : > { %720 = vmatpush1.bf16.msra.mxu0 %v714_v40  ;;  %p1303_p1 = pnand %p1302_p0, %p1489_p3  ;;  %p1310_p6 = por %p1309_p5, %p1308_p4 }
  0xaf   : > { %v412_v44 = vpop.permute.xlu1 %411 }
  0xb0   : > { %v416_v46 = vsel %vm415_vm6, %v410_v43, %v412_v44  ;;  %p1304_p2 = pneg %p1303_p1 }
  0xb1   : > { %v422_v47 = vsel %vm294_vm1, %v416_v46, 0  ;;  %v414_v48 = vpop.permute.xlu0 %413 }
  0xb2   : > { %v417_v49 = vsel %vm415_vm6, %v412_v44, %v414_v48  ;;  %p1311_p7 = pnand %p1310_p6, %p1304_p2 }
  0xb3   : > { %1126 = vmatmul.mubr.msk.bf16.vlgmr.msra.gmra.mrb[0].mxu1 %vm290_vm2, %v1295_v45  ;;  %v775_v50 = vpop.permute.xlu1 %774  ;;  %1130 = vmatprep.subr.msk.bf16.mxu1 %vm294_vm1, %v417_v49 }
  0xb4   : > { %428 = vmatpush1.bf16.msra.mxu1 %v422_v47  ;;  %459 = vmatprep.mubr.bf16.mxu1 %v1398_v6 }
  0xb5   : > { %v777_v52 = vpop.permute.xlu0 %776 }
  0xb6   : > { %v781_v53 = vsel %vm780_vm7, %v775_v50, %v777_v52 }
  0xb7   : > { %1151 = vmatmul.mubr.msk.bf16.vlgmr.msra.gmra.mrb[0].mxu0 %vm290_vm2, %v1296_v51  ;;  %v787_v54 = vsel %vm294_vm1, %v781_v53, 0  ;;  %v779_v55 = vpop.permute.xlu1 %778 }
  0xb8   : > { %v782_v56 = vsel %vm780_vm7, %v777_v52, %v779_v55  ;;  %824 = vmatprep.mubr.bf16.mxu0 %v1398_v6 }
  0xb9   : > { %1155 = vmatprep.subr.msk.bf16.mxu0 %vm294_vm1, %v782_v56  ;;  %v483_v57 = vpop.permute.xlu0 %482 }
  0xba   : > { %793 = vmatpush1.bf16.msra.mxu0 %v787_v54 }
  0xbb   : > { %v485_v58 = vpop.permute.xlu1 %484 }
  0xbc   : > { %v489_v60 = vsel %vm488_vm8, %v483_v57, %v485_v58 }
  0xbd   : > { %v495_v61 = vsel %vm294_vm1, %v489_v60, 0  ;;  %v487_v62 = vpop.permute.xlu0 %486 }
  0xbe   : > { %v490_v63 = vsel %vm488_vm8, %v485_v58, %v487_v62 }
  0xbf   : > { %1131 = vmatmul.mubr.msk.bf16.vlgmr.msra.gmra.mrb[0].mxu1 %vm290_vm2, %v1297_v59  ;;  %v848_v0 = vpop.permute.xlu1 %847  ;;  %1135 = vmatprep.subr.msk.bf16.mxu1 %vm294_vm1, %v490_v63 }
  0xc0   : > { %501 = vmatpush1.bf16.msra.mxu1 %v495_v61  ;;  %532 = vmatprep.mubr.bf16.mxu1 %v1398_v6 }
  0xc1   : > { %v850_v2 = vpop.permute.xlu0 %849 }
  0xc2   : > { %v854_v3 = vsel %vm853_vm9, %v848_v0, %v850_v2 }
  0xc3   : > { %1156 = vmatmul.mubr.msk.bf16.vlgmr.msra.gmra.mrb[0].mxu0 %vm290_vm2, %v1298_v1  ;;  %v860_v4 = vsel %vm294_vm1, %v854_v3, 0  ;;  %v852_v5 = vpop.permute.xlu1 %851 }
  0xc4   : > { %v855_v8 = vsel %vm853_vm9, %v850_v2, %v852_v5  ;;  %897 = vmatprep.mubr.bf16.mxu0 %v1398_v6 }
  0xc5   : > { %1160 = vmatprep.subr.msk.bf16.mxu0 %vm294_vm1, %v855_v8 }
  0xc6   : > { %866 = vmatpush1.bf16.msra.mxu0 %v860_v4 }
  0xcb   : > { %1136 = vmatmul.mubr.msk.bf16.vlgmr.msra.gmra.mrb[0].mxu1 %vm290_vm2, %v1299_v9 }
  0xcc   : > { %981 = vmatprep.mubr.bf16.mxu1 %v1398_v6 }
  0xcf   : > { %1161 = vmatmul.mubr.msk.bf16.vlgmr.msra.gmra.mrb[0].mxu0 %vm290_vm2, %v1300_v10 }
  0xd2   : > { %v917_v20 = vpop.permute.xlu0 %916 }
  0xd4   : > { %v922_v28 = vpop.permute.xlu1 %921 }
  0xd8   : > { %v943_v43 = vpop.permute.xlu1 %942 }
  0xdc   : > { %v1000_v46 = vpop.permute.xlu1 %999 }
 0x11d   : > { %v1288_v42 = vpop.permute.xlu0 %1287 }
 0x11e   : > { %v1290_v44 = vunpack.i.h.bf16 %v1288_v42  ;;  %v1289_v45 = vunpack.i.l.bf16 %v1288_v42 }
 0x120   : > { %v1002_v48 = vsel %vm561_vm0, %v1289_v45, %v1290_v44  ;;  %v1003_v51 = vsel %vm561_vm0, %v1290_v44, %v1000_v46 }
 0x19e   : > { %v534_v15 = vpop.f32.mrb[0].mxu1 }
 0x19f   : > { %v536_v16 = vpop.f32.mrb[1].mxu1 }
 0x1a0   : > { %v538_v17 = vpop.f32.mrb[2].mxu1 }
 0x1a1   : > { %v540_v18 = vpop.f32.mrb[3].mxu1 }
 0x1a2   : > { %v899_v19 = vpop.f32.mrb[0].mxu0 }
 0x1a3   : > { %v1169_v21 = vadd.f32 %v899_v19, %v534_v15  ;;  %v901_v6 = vpop.f32.mrb[1].mxu0 }
 0x1a4   : > { %v1170_v22 = vadd.f32 %v901_v6, %v536_v16  ;;  %v903_v23 = vpop.f32.mrb[2].mxu0 }
 0x1a5   : > { %v924_v24 = vadd.f32 %v1169_v21, %v917_v20  ;;  %v1171_v25 = vadd.f32 %v903_v23, %v538_v17  ;;  %v905_v26 = vpop.f32.mrb[3].mxu0 }
 0x1a6   : > { %v925_v7 = vadd.f32 %v1170_v22, %v917_v20  ;;  %v1172_v27 = vadd.f32 %v905_v26, %v540_v18 }
 0x1a7   : > { %v928_v29 = vmax.f32 %v924_v24, 0.0  ;;  %v926_v30 = vadd.f32 %v1171_v25, %v922_v28 }
 0x1a8   : > { %v929_v31 = vmax.f32 %v925_v7, 0.0  ;;  %v927_v32 = vadd.f32 %v1172_v27, %v922_v28 }
 0x1a9   : > { %v930_v33 = vmax.f32 %v926_v30, 0.0  ;;  %v932_v35 = vmin.f32 %v928_v29, 6.0 }
 0x1aa   : > { %v931_v34 = vmax.f32 %v927_v32, 0.0  ;;  %v933_v37 = vmin.f32 %v929_v31, 6.0 }
 0x1ab   : > { %v934_v36 = vmin.f32 %v930_v33, 6.0 }
 0x1ac   : > { %v935_v38 = vmin.f32 %v931_v34, 6.0 }
 0x1ad   : > { %v937_v39 = vpack.c.bf16 %v934_v36, %v932_v35 }
 0x1ae   : > { %v938_v40 = vpack.c.bf16 %v935_v38, %v933_v37 }
 0x1b0   : > { %949 = vmatprep.subr.bf16.mxu1 %v938_v40 }
 0x1b1   : > { %950 = vmatpush1.bf16.msra.mxu1 %v937_v39 }
 0x1b4   : > { %1162 = vmatmul.mubr.msk.bf16.vlgmr.msra.gmra.mrb[4].mxu1 %vm945_vm10, %v936_v41 }
 0x287   : > { %v983_v47 = vpop.f32.mrb[4].mxu1 }
 0x288   : > { %v984_v49 = vadd.f32 %v983_v47, %v943_v43  ;;  %v985_v50 = vpop.f32.mrb[5].mxu1 }
 0x289   : > { %v986_v52 = vadd.f32 %v985_v50, %v943_v43  ;;  %v987_v53 = vpop.f32.mrb[6].mxu1 }
 0x28a   : > { %v1006_v54 = vadd.f32 %v1002_v48, %v984_v49  ;;  %v988_v55 = vpop.f32.mrb[7].mxu1 }
 0x28b   : > { %v1007_v56 = vadd.f32 %v1003_v51, %v986_v52 }
 0x28d   : > { %v1010_v57 = vcombine.low %v1006_v54, %v1007_v56 }
 0x28f   : > { %1012 = vst [vmem:[%s241_s15] sm:$0xff] %v1010_v57 }
 0x290   : > { %1314 = shalt.err (!%p1311_p7)
}
 0x291   : > { %s1315_s30 = scalar_lea.hbm %s1640_s17, 128  ;;  %s1319_s14 = scalar_lea.hbm %s1698_s5, 512 }
 0x292   : > { %p1316_p9 = scmp.ne.s32.totalorder %s1640_s17, %s1315_s30  ;;  %p1320_p12 = scmp.lt.u32.totalorder %s1640_s17, %s1698_s5 }
 0x293   : > { %p1321_p13 = scmp.lt.u32.totalorder %s1319_s14, %s1315_s30  ;;  %p1323_p1 = scmp.lt.u32.totalorder %s1315_s30, %s1640_s17 }
 0x294   : > { %p1317_p10 = pnand %p1316_p9, %p1489_p3 }
 0x295   : > { %p1322_p0 = por %p1321_p13, %p1320_p12 }
 0x296   : > { %p1318_p11 = pneg %p1317_p10 }
 0x297   : > { %p1324_p2 = por %p1323_p1, %p1322_p0 }
 0x299   : > { %p1325_p4 = pnand %p1324_p2, %p1318_p11 }
 0x29b   : > { %1328 = shalt.err (!%p1325_p4)
}
 0x29c   : > { %1203 = dma.vmem_to_hbm [thread:$0]  (%p1489_p3), %s1642_s16, 128, %s1640_s17, %s1014_s26  }
 0x29d PF: > { %p1209_p5 = scmp.ge.s32.totalorder %s1395_s25, 2  ;;  %s1042_s22 = sand.u32 1, %s1367_s18  }
 0x29e   : > { %s1043_s8 = scalar_lea.sflag [#allocation3], %s1042_s22 }
 0x29f   : > { %p1206_p6 = pnand %p1209_p5, %p1498_p8 }
 0x2a1   : > { %1362 = dma.done.wait (!%p1206_p6), %s1043_s8, 128  }
 0x2a2   : > { %1364 = vsyncadd (!%p1206_p6), %s1043_s8, 4294967168  ;;  %s18_s25 = sadd.s32 1, %s1395_s25   ;;  %s1701_s18 = smov %s1371_s19 }
 0x2a3   : > { %p15_p7 = scmp.ge.s32.totalorder %s18_s25, 6   ;;  %s1702_s19 = smov %s1375_s20 }
 0x2a4   : > { %s1703_s20 = smov %s1507_s11  ;;  %s1704_s21 = smov %s1387_s23 }
 0x2a5   : > { %s1705_s22 = smov %s1391_s24  ;;  %s1706_s23 = smov %s1709_s28 }
 0x2a6   : > { %s1707_s24 = smov %s1713_s29  ;;  %17 = sbr.rel (!%p15_p7) target bundleno = 5 (0x5), region = 83 }
 0x2ad   :  { %1048 = vsyncpa [#allocation3], 1 }
 0x2ae   :  { %1050 = vsyncpa [#allocation3 + $0x1], 1 }

</bundles_post_ra>
